<compile_context>
chip_gen: v6e
topology: v6e:2x2x1
jax: 0.10.0
libtpu: 0.0.40
codegen_flags: <defaults>
</compile_context>

<pallas_src>
import functools

import jax
import jax.numpy as jnp
from jax import lax
from jax.experimental import pallas as pl
from jax.experimental.pallas import tpu as pltpu

_VALID_FLAGS = ("GAUSSIAN", "LINEAR", "QUADRATIC", "INVERSE_QUADRATIC")


def _round_up(x, m):
    return ((x + m - 1) // m) * m


def _rbf_kernel(x_ref, c_ref, xsq_ref, csq_ref, scale_ref, o_ref, *, basis_func_flag):
    # x_ref    : (TM, TK)       input tile (f32 or bf16)
    # c_ref    : (TN, TK)       centres tile (f32 or bf16)
    # xsq_ref  : (TM, 1)  f32   hoisted ||x||^2 (full-IN norm)
    # csq_ref  : (1, TN)  f32   hoisted ||c||^2 (full-IN norm)
    # scale_ref: (1, TN)  f32   1/sigma (LINEAR) or 1/sigma^2 (others)
    # o_ref    : (TM, TN) f32   output tile; resident across K => accumulator
    k = pl.program_id(2)

    @pl.when(k == 0)
    def _():
        o_ref[...] = jnp.zeros_like(o_ref)

    # Only per-step work: x . c^T on the MXU, f32 accumulation into o_ref.
    # Contraction of the last dims of both operands (flash-attention-style
    # q.k^T pattern) avoids any wrapper-side transpose of the centres matrix.
    o_ref[...] += lax.dot_general(
        x_ref[...], c_ref[...],
        dimension_numbers=(((1,), (1,)), ((), ())),
        preferred_element_type=jnp.float32,
    )

    @pl.when(k == pl.num_programs(2) - 1)
    def _():
        # ||x - c||^2 = ||x||^2 + ||c||^2 - 2 x.c  (clamped against cancellation)
        sq_dist = jnp.maximum(
            xsq_ref[...] + csq_ref[...] - 2.0 * o_ref[...], 0.0)  # (TM, TN)
        scale = scale_ref[...]                                    # (1, TN)
        if basis_func_flag == "GAUSSIAN":
            phi = jnp.exp(-(sq_dist * scale))        # scale = 1/sigma^2, no sqrt
        elif basis_func_flag == "LINEAR":
            phi = jnp.sqrt(sq_dist) * scale          # scale = 1/sigma
        elif basis_func_flag == "QUADRATIC":
            phi = sq_dist * scale                    # scale = 1/sigma^2, no sqrt
        elif basis_func_flag == "INVERSE_QUADRATIC":
            phi = 1.0 / (1.0 + sq_dist * scale)      # scale = 1/sigma^2, no sqrt
        else:  # validated in the wrapper; trace-time guard only
            raise ValueError(f"Unknown basis_func_flag: {basis_func_flag}")
        o_ref[...] = phi.astype(o_ref.dtype)


def rbf_forward(inputs, centres, log_sigmas, basis_func_flag="GAUSSIAN",
                *, tm=512, tn=512, tk=1024, use_bf16_mxu=False):
    """Pallas TPU forward pass of the RBF layer.

    inputs:     (B, IN)   float
    centres:    (OUT, IN) float
    log_sigmas: (OUT,)    float
    returns:    (B, OUT)  float32

    use_bf16_mxu=True halves the streamed bytes of the x/centres tiles and
    uses bf16 MXU operands (f32 accumulation/epilogue); not bit-parity with
    the f32 PyTorch reference (~1e-3 relative on the cross term).
    """
    flag = basis_func_flag.upper()
    if flag not in _VALID_FLAGS:
        raise ValueError(f"Unknown basis_func_flag: {basis_func_flag}")

    B, IN = inputs.shape
    OUT, IN_c = centres.shape
    assert IN == IN_c, (IN, IN_c)

    # Promote only when necessary (avoid an extra HBM pass for f32 callers).
    if inputs.dtype != jnp.float32:
        inputs = inputs.astype(jnp.float32)
    if centres.dtype != jnp.float32:
        centres = centres.astype(jnp.float32)
    log_sigmas = log_sigmas.astype(jnp.float32)

    # Tile sizes: sublane-aligned batch tiles, lane-dense (>=128) out/in tiles.
    tm = max(8, _round_up(tm, 8))
    tn = max(128, _round_up(tn, 128))
    tk = max(128, _round_up(tk, 128))
    TM = min(tm, _round_up(B, 8))
    TN = min(tn, _round_up(OUT, 128))
    TK = min(tk, _round_up(IN, 128))
    Bp = _round_up(B, TM)
    OUTp = _round_up(OUT, TN)
    INp = _round_up(IN, TK)

    # Keep >=2 parallel tiles when possible so both v7x TensorCores get work
    # (dimension_semantics marks i/j "parallel"); harmless on single-TC chips.
    while (Bp // TM) * (OUTp // TN) < 2:
        if TN >= 256:
            TN = _round_up(TN // 2, 128)
            OUTp = _round_up(OUT, TN)
        elif TM >= 16:
            TM = _round_up(TM // 2, 8)
            Bp = _round_up(B, TM)
        else:
            break

    # Hoisted per-row / per-centre terms (cross-grid-iteration CSE), in f32.
    x_sq = jnp.sum(inputs * inputs, axis=-1)             # (B,)
    c_sq = jnp.sum(centres * centres, axis=-1)           # (OUT,)
    if flag == "LINEAR":
        scale = jnp.exp(-log_sigmas)                     # 1/sigma
    else:
        scale = jnp.exp(-2.0 * log_sigmas)               # 1/sigma^2

    # Optional bf16 MXU operands (norms above already computed from f32).
    mxu_dtype = jnp.bfloat16 if use_bf16_mxu else jnp.float32
    x_work = inputs.astype(mxu_dtype) if use_bf16_mxu else inputs
    c_work = centres.astype(mxu_dtype) if use_bf16_mxu else centres

    # Pad only when needed (zero-padded K columns contribute 0 to the dot).
    if Bp != B or INp != IN:
        x_p = jnp.pad(x_work, ((0, Bp - B), (0, INp - IN)))
    else:
        x_p = x_work
    if OUTp != OUT or INp != IN:
        c_p = jnp.pad(c_work, ((0, OUTp - OUT), (0, INp - IN)))
    else:
        c_p = c_work
    xsq_p = (jnp.pad(x_sq, (0, Bp - B)) if Bp != B else x_sq).reshape(Bp, 1)
    csq_p = (jnp.pad(c_sq, (0, OUTp - OUT)) if OUTp != OUT else c_sq).reshape(1, OUTp)
    scale_p = (jnp.pad(scale, (0, OUTp - OUT)) if OUTp != OUT else scale).reshape(1, OUTp)

    kernel = functools.partial(_rbf_kernel, basis_func_flag=flag)
    grid = (Bp // TM, OUTp // TN, INp // TK)

    # VMEM budget: double-buffered x/c tiles + resident f32 output tile + the
    # small side operands.  Keep the limit >= 32 MiB (raises v5e's 16 MiB
    # scoped default) and <= 48 MiB (under v7x's 64 MiB physical VMEM).
    itemsize = jnp.dtype(mxu_dtype).itemsize
    vmem_est = (2 * (TM * TK + TN * TK) * itemsize
                + 2 * TM * TN * 4
                + 2 * (TM + 2 * TN) * 4)
    vmem_limit = int(min(max(2 * vmem_est + (2 << 20), 32 << 20), 48 << 20))

    out_p = pl.pallas_call(
        kernel,
        out_shape=jax.ShapeDtypeStruct((Bp, OUTp), jnp.float32),
        grid_spec=pltpu.PrefetchScalarGridSpec(
            num_scalar_prefetch=0,
            grid=grid,
            in_specs=[
                pl.BlockSpec((TM, TK), lambda i, j, k: (i, k)),   # x tile
                pl.BlockSpec((TN, TK), lambda i, j, k: (j, k)),   # centres tile
                pl.BlockSpec((TM, 1), lambda i, j, k: (i, 0)),    # ||x||^2
                pl.BlockSpec((1, TN), lambda i, j, k: (0, j)),    # ||c||^2
                pl.BlockSpec((1, TN), lambda i, j, k: (0, j)),    # sigma scale
            ],
            out_specs=pl.BlockSpec((TM, TN), lambda i, j, k: (i, j)),
        ),
        compiler_params=pltpu.CompilerParams(
            dimension_semantics=("parallel", "parallel", "arbitrary"),
            vmem_limit_bytes=vmem_limit,
        ),
    )(x_p, c_p, xsq_p, csq_p, scale_p)

    return out_p[:B, :OUT]


def rbf_reference(inputs, centres, log_sigmas, basis_func_flag="GAUSSIAN"):
    """Plain-JAX reference matching the PyTorch forward exactly."""
    x = inputs[:, None, :]                    # (B, 1, IN)
    c = centres[None, :, :]                   # (1, OUT, IN)
    dist = jnp.sqrt(jnp.sum((x - c) ** 2, axis=-1)) / jnp.exp(log_sigmas)[None, :]
    flag = basis_func_flag.upper()
    if flag == "GAUSSIAN":
        return jnp.exp(-(dist ** 2))
    if flag == "LINEAR":
        return dist
    if flag == "QUADRATIC":
        return dist ** 2
    if flag == "INVERSE_QUADRATIC":
        return 1.0 / (1.0 + dist ** 2)
    raise ValueError(flag)


if __name__ == "__main__":
    key = jax.random.PRNGKey(0)
    k_x, k_c, k_s, k_x2, k_c2, k_s2 = jax.random.split(key, 6)

    # Small shapes consistent with the module: flat feature inputs.
    B, IN_SIZE, OUT_SIZE = 8, 32, 16
    inputs = jax.random.normal(k_x, (B, IN_SIZE), dtype=jnp.float32)
    # reset_parameters(): centres ~ N(0, 1); perturb log_sigmas slightly so the
    # sigma-scale path is exercised (init is 0).
    centres = jax.random.normal(k_c, (OUT_SIZE, IN_SIZE), dtype=jnp.float32)
    log_sigmas = 0.1 * jax.random.normal(k_s, (OUT_SIZE,), dtype=jnp.float32)

    for flag in _VALID_FLAGS:
        out = rbf_forward(inputs, centres, log_sigmas, basis_func_flag=flag)
        out = jax.block_until_ready(out)
        ref = rbf_reference(inputs, centres, log_sigmas, basis_func_flag=flag)
        assert out.shape == (B, OUT_SIZE)
        assert jnp.allclose(out, ref, atol=2e-5, rtol=2e-5), f"mismatch ({flag})"

    # Second config: multi-tile grid + K accumulation + padding (grid (2,2,3)).
    B2, IN2, OUT2 = 16, 300, 200
    inputs2 = jax.random.normal(k_x2, (B2, IN2), dtype=jnp.float32)
    centres2 = jax.random.normal(k_c2, (OUT2, IN2), dtype=jnp.float32)
    log_sigmas2 = 0.1 * jax.random.normal(k_s2, (OUT2,), dtype=jnp.float32)
    out2 = rbf_forward(inputs2, centres2, log_sigmas2, basis_func_flag="GAUSSIAN",
                       tm=8, tn=128, tk=128)
    out2 = jax.block_until_ready(out2)
    ref2 = rbf_reference(inputs2, centres2, log_sigmas2, basis_func_flag="GAUSSIAN")
    assert out2.shape == (B2, OUT2)
    assert jnp.allclose(out2, ref2, atol=2e-4, rtol=2e-4), "mismatch (tiled GAUSSIAN)"

    # Opt-in bf16 MXU path (default tiles; not bit-parity with f32 reference).
    out3 = rbf_forward(inputs2, centres2, log_sigmas2, basis_func_flag="QUADRATIC",
                       use_bf16_mxu=True)
    out3 = jax.block_until_ready(out3)
    ref3 = rbf_reference(inputs2, centres2, log_sigmas2, basis_func_flag="QUADRATIC")
    assert out3.shape == (B2, OUT2)
    assert jnp.allclose(out3, ref3, atol=5e-2, rtol=5e-2), "mismatch (bf16 QUADRATIC)"

    print("KERNEL_OK")
</pallas_src>

<mosaic_0001>
module attributes {stable_mosaic.version = 11 : i64} {
  func.func @_rbf_kernel(%arg0: i32, %arg1: i32, %arg2: i32, %arg3: memref<8x128xf32, #tpu.memory_space<vmem>>, %arg4: memref<128x128xf32, #tpu.memory_space<vmem>>, %arg5: memref<8x1xf32, #tpu.memory_space<vmem>>, %arg6: memref<1x128xf32, #tpu.memory_space<vmem>>, %arg7: memref<1x128xf32, #tpu.memory_space<vmem>>, %arg8: memref<8x128xf32, #tpu.memory_space<vmem>>) attributes {dimension_semantics = [#tpu.dimension_semantics<parallel>, #tpu.dimension_semantics<parallel>, #tpu.dimension_semantics<arbitrary>], iteration_bounds = array<i64: 1, 1, 1>, scalar_prefetch = 0 : i64, scratch_operands = 0 : i64, tpu.core_type = #tpu.core_type<tc>, window_params = [{transform_indices = @transform_0, window_bounds = array<i64: 8, 128>}, {transform_indices = @transform_1, window_bounds = array<i64: 128, 128>}, {transform_indices = @transform_2, window_bounds = array<i64: 8, 1>}, {transform_indices = @transform_3, window_bounds = array<i64: 1, 128>}, {transform_indices = @transform_4, window_bounds = array<i64: 1, 128>}, {transform_indices = @transform_5, window_bounds = array<i64: 8, 128>}]} {
    %c0_i32 = arith.constant 0 : i32
    %0 = arith.cmpi eq, %arg2, %c0_i32 : i32
    %1 = arith.extui %0 : i1 to i32
    %c0_i32_0 = arith.constant 0 : i32
    %2 = arith.cmpi ne, %1, %c0_i32_0 : i32
    scf.if %2 {
      %cst_10 = arith.constant 0.000000e+00 : f32
      %12 = vector.broadcast %cst_10 : f32 to vector<8x128xf32>
      %c0_11 = arith.constant 0 : index
      %c0_12 = arith.constant 0 : index
      %13 = vector.load %arg8[%c0_11, %c0_12] : memref<8x128xf32, #tpu.memory_space<vmem>>, vector<8x128xf32>
      tpu.vector_store %arg8[%c0_11, %c0_12], %12 {strides = array<i32>} : memref<8x128xf32, #tpu.memory_space<vmem>>, vector<8x128xf32>,
    } else {
    }
    %c0 = arith.constant 0 : index
    %c0_1 = arith.constant 0 : index
    %3 = vector.load %arg8[%c0, %c0_1] : memref<8x128xf32, #tpu.memory_space<vmem>>, vector<8x128xf32>
    %c0_2 = arith.constant 0 : index
    %c0_3 = arith.constant 0 : index
    %4 = vector.load %arg3[%c0_2, %c0_3] : memref<8x128xf32, #tpu.memory_space<vmem>>, vector<8x128xf32>
    %c0_4 = arith.constant 0 : index
    %c0_5 = arith.constant 0 : index
    %5 = vector.load %arg4[%c0_4, %c0_5] : memref<128x128xf32, #tpu.memory_space<vmem>>, vector<128x128xf32>
    %cst = arith.constant dense<0.000000e+00> : vector<8x128xf32>
    %6 = tpu.matmul %4, %5, %cst {dimension_numbers = #tpu.dot_dimension_numbers<[1], [1], [0], [0], [0, 0, 1, 0], [], []>} : vector<8x128xf32>, vector<128x128xf32>, vector<8x128xf32> -> vector<8x128xf32>
    %7 = arith.addf %3, %6 : vector<8x128xf32>
    %c0_6 = arith.constant 0 : index
    %c0_7 = arith.constant 0 : index
    %8 = vector.load %arg8[%c0_6, %c0_7] : memref<8x128xf32, #tpu.memory_space<vmem>>, vector<8x128xf32>
    tpu.vector_store %arg8[%c0_6, %c0_7], %7 {strides = array<i32>} : memref<8x128xf32, #tpu.memory_space<vmem>>, vector<8x128xf32>,
    %c0_i32_8 = arith.constant 0 : i32
    %9 = arith.cmpi eq, %arg2, %c0_i32_8 : i32
    %10 = arith.extui %9 : i1 to i32
    %c0_i32_9 = arith.constant 0 : i32
    %11 = arith.cmpi ne, %10, %c0_i32_9 : i32
    scf.if %11 {
      %c0_10 = arith.constant 0 : index
      %c0_11 = arith.constant 0 : index
      %12 = vector.load %arg5[%c0_10, %c0_11] : memref<8x1xf32, #tpu.memory_space<vmem>>, vector<8x1xf32>
      %c0_12 = arith.constant 0 : index
      %c0_13 = arith.constant 0 : index
      %13 = vector.load %arg6[%c0_12, %c0_13] : memref<1x128xf32, #tpu.memory_space<vmem>>, vector<1x128xf32>
      %14 = vector.broadcast %12 : vector<8x1xf32> to vector<8x128xf32>
      %15 = vector.broadcast %13 : vector<1x128xf32> to vector<8x128xf32>
      %16 = arith.addf %14, %15 : vector<8x128xf32>
      %c0_14 = arith.constant 0 : index
      %c0_15 = arith.constant 0 : index
      %17 = vector.load %arg8[%c0_14, %c0_15] : memref<8x128xf32, #tpu.memory_space<vmem>>, vector<8x128xf32>
      %cst_16 = arith.constant 2.000000e+00 : f32
      %18 = vector.broadcast %cst_16 : f32 to vector<8x128xf32>
      %19 = arith.mulf %18, %17 : vector<8x128xf32>
      %20 = arith.subf %16, %19 : vector<8x128xf32>
      %cst_17 = arith.constant 0.000000e+00 : f32
      %21 = vector.broadcast %cst_17 : f32 to vector<8x128xf32>
      %22 = arith.maximumf %20, %21 : vector<8x128xf32>
      %c0_18 = arith.constant 0 : index
      %c0_19 = arith.constant 0 : index
      %23 = vector.load %arg7[%c0_18, %c0_19] : memref<1x128xf32, #tpu.memory_space<vmem>>, vector<1x128xf32>
      %24 = vector.broadcast %23 : vector<1x128xf32> to vector<8x128xf32>
      %25 = arith.mulf %22, %24 : vector<8x128xf32>
      %cst_20 = arith.constant 0.000000e+00 : f32
      %26 = vector.broadcast %cst_20 : f32 to vector<8x128xf32>
      %27 = arith.subf %26, %25 : vector<8x128xf32>
      %28 = math.exp %27 : vector<8x128xf32>
      %c0_21 = arith.constant 0 : index
      %c0_22 = arith.constant 0 : index
      %29 = vector.load %arg8[%c0_21, %c0_22] : memref<8x128xf32, #tpu.memory_space<vmem>>, vector<8x128xf32>
      tpu.vector_store %arg8[%c0_21, %c0_22], %28 {strides = array<i32>} : memref<8x128xf32, #tpu.memory_space<vmem>>, vector<8x128xf32>,
    } else {
    }
    return
  }
  func.func @transform_0(%arg0: i32, %arg1: i32, %arg2: i32) -> (i32, i32) {
    %c0_i32 = arith.constant 0 : i32
    return %arg0, %arg2 : i32, i32
  }
  func.func @transform_1(%arg0: i32, %arg1: i32, %arg2: i32) -> (i32, i32) {
    %c0_i32 = arith.constant 0 : i32
    return %arg1, %arg2 : i32, i32
  }
  func.func @transform_2(%arg0: i32, %arg1: i32, %arg2: i32) -> (i32, i32) {
    %c0_i32 = arith.constant 0 : i32
    %c0_i32_0 = arith.constant 0 : i32
    return %arg0, %c0_i32 : i32, i32
  }
  func.func @transform_3(%arg0: i32, %arg1: i32, %arg2: i32) -> (i32, i32) {
    %c0_i32 = arith.constant 0 : i32
    %c0_i32_0 = arith.constant 0 : i32
    return %c0_i32, %arg1 : i32, i32
  }
  func.func @transform_4(%arg0: i32, %arg1: i32, %arg2: i32) -> (i32, i32) {
    %c0_i32 = arith.constant 0 : i32
    %c0_i32_0 = arith.constant 0 : i32
    return %c0_i32, %arg1 : i32, i32
  }
  func.func @transform_5(%arg0: i32, %arg1: i32, %arg2: i32) -> (i32, i32) {
    %c0_i32 = arith.constant 0 : i32
    return %arg0, %arg1 : i32, i32
  }
}

</mosaic_0001>

<bundles_post_ra>
// kernel: tpu_custom_call.1
= control target key start
LH: loop header
LB: loop body
LE: loop exit
PB: predicated region body
PF: predicated region fallthrough
CT: control target
= control target key end

     0   :  { %10 = vsyncpa [#allocation3], 0  ;;  %s341_s0 = inlined_call_operand.vmem [shape: f32[8,128], index: 0, kind: input, shape index: {}]   ;;  %s342_s1 = inlined_call_operand.hbm [shape: f32[128,128], index: 1, kind: input, shape index: {}]   ;;  %s343_s2 = inlined_call_operand.vmem [shape: f32[8,1], index: 2, kind: input, shape index: {}]   ;;  %s344_s3 = inlined_call_operand.vmem [shape: f32[1,128], index: 3, kind: input, shape index: {}]   ;;  %s345_s4 = inlined_call_operand.vmem [shape: f32[1,128], index: 4, kind: input, shape index: {}]   ;;  %s346_s5 = inlined_call_operand.hbm [shape: f32[8,128], index: 5, kind: output, shape index: {}]  }
   0x1   :  { %11 = vsyncpa [#allocation4], 0  ;;  %s286_s18 = smov [#allocation2]  }
   0x2   :  { %s19_s19 = sshll.u32 %s286_s18, 4  ;;  %s20_s19 = int_to_ptr.vmem [resolvable:$true] %s19_s19 }
   0x3   :  { %s250_s20 = scalar_lea.vmem %s20_s19, 2048  ;;  %p255_p1 = scmp.lt.s32.totalorder %s20_s19, %s20_s19 }
   0x4   :  { %p251_p0 = scmp.ne.s32.totalorder %s20_s19, %s250_s20  ;;  %p256_p2 = scmp.lt.s32.totalorder %s250_s20, %s250_s20 }
   0x6   :  { %p257_p3 = por %p256_p2, %p255_p1 }
   0x8   :  { %p258_p4 = pnand %p257_p3, %p251_p0 }
   0xa   :  { %261 = shalt.err (!%p258_p4)
}
   0xb   :  { %s287_s21 = smov 128   ;;  %s288_s22 = smov 8  }
   0xc   :  { %25 = dma.hbm_to_vmem [thread:$0]  %s342_s1, 2048, %s20_s19, [#allocation3], %s287_s21, %s287_s21, %s288_s22  }
   0xd   :  { %282 = dma.done.wait [#allocation3], 2048  }
   0xe   :  { %283 = vsyncadd [#allocation3], 4294965248  ;;  %v289_v0 = vmov 0.0   ;;  %vm290_vm0 = vmmov 0   ;;  %v291_v1 = vmov 0   ;;  %v57_v2 = vld [vmem:[#allocation2 + $0x78] sm:$0xff] }
   0xf   :  { %197 = vmatprep.subr.mxu0 %v289_v0  ;;  %229 = vmatprep.mubr.msk.f32.mxu0 %vm290_vm0, %v289_v0  ;;  %v56_v3 = vld [vmem:[#allocation2 + $0x70] sm:$0xff]  ;;  %v133_v4 = vld [vmem:[%s343_s2] sm:$0xff]  ;;  %v55_v5 = vld [vmem:[#allocation2 + $0x68] sm:$0xff] }
  0x10   :  { %239 = vset.pattern.permute.xlu0 %v291_v1  ;;  %198 = vmatpush3.xpose.msra.mxu0 %v57_v2  ;;  %v54_v6 = vld [vmem:[#allocation2 + $0x60] sm:$0xff]  ;;  %v53_v7 = vld [vmem:[#allocation2 + $0x58] sm:$0xff]  ;;  %v52_v8 = vld [vmem:[#allocation2 + $0x50] sm:$0xff] }
  0x11   :  { %199 = vmatprep.subr.mxu0 %v289_v0  ;;  %137 = vperm.xlu0 %239, %v133_v4   ;;  %v51_v9 = vld [vmem:[#allocation2 + $0x48] sm:$0xff]  ;;  %v50_v10 = vld [vmem:[#allocation2 + $0x40] sm:$0xff]  ;;  %v49_v11 = vld [vmem:[#allocation2 + $0x38] sm:$0xff] }
  0x12   :  { %v48_v12 = vld [vmem:[#allocation2 + $0x30] sm:$0xff]  ;;  %v47_v13 = vld [vmem:[#allocation2 + $0x28] sm:$0xff]  ;;  %v46_v14 = vld [vmem:[#allocation2 + $0x20] sm:$0xff] }
  0x13   :  { %v45_v15 = vld [vmem:[#allocation2 + $0x18] sm:$0xff]  ;;  %v44_v16 = vld [vmem:[#allocation2 + $0x10] sm:$0xff]  ;;  %v43_v17 = vld [vmem:[#allocation2 + $0x8] sm:$0xff] }
  0x14   :  { %200 = vmatpush3.xpose.msra.mxu0 %v56_v3  ;;  %v42_v18 = vld [vmem:[#allocation2] sm:$0xff] }
  0x15   :  { %201 = vmatprep.subr.mxu0 %v289_v0  ;;  %v41_v19 = vld [vmem:[%s341_s0] sm:$0xff]  ;;  %s292_s0 = smov [#allocation5]  }
  0x16   :  { %v178_v20 = vld [vmem:[%s344_s3] ss:$0 sm:$0xff]  ;;  %s169_s6 = sshll.u32 %s292_s0, 4  ;;  %s170_s6 = int_to_ptr.vmem [resolvable:$true] %s169_s6 }
  0x17   :  { %v179_v27 = vld [vmem:[%s345_s4] ss:$0 sm:$0xff]  ;;  %s262_s3 = scalar_lea.vmem %s170_s6, 128  ;;  %p267_p6 = scmp.lt.s32.totalorder %s170_s6, %s170_s6 }
  0x18   :  { %202 = vmatpush3.xpose.msra.mxu0 %v55_v5  ;;  %p263_p5 = scmp.ne.s32.totalorder %s170_s6, %s262_s3  ;;  %p268_p7 = scmp.lt.s32.totalorder %s262_s3, %s262_s3 }
  0x19   :  { %203 = vmatprep.subr.mxu0 %v289_v0 }
  0x1a   :  { %p269_p8 = por %p268_p7, %p267_p6 }
  0x1c   :  { %204 = vmatpush3.xpose.msra.mxu0 %v54_v6  ;;  %p270_p9 = pnand %p269_p8, %p263_p5 }
  0x1d   :  { %205 = vmatprep.subr.mxu0 %v289_v0 }
  0x20   :  { %206 = vmatpush3.xpose.msra.mxu0 %v53_v7 }
  0x21   :  { %207 = vmatprep.subr.mxu0 %v289_v0 }
  0x24   :  { %208 = vmatpush3.xpose.msra.mxu0 %v52_v8 }
  0x25   :  { %209 = vmatprep.subr.mxu0 %v289_v0 }
  0x28   :  { %210 = vmatpush3.xpose.msra.mxu0 %v51_v9 }
  0x29   :  { %211 = vmatprep.subr.mxu0 %v289_v0 }
  0x2c   :  { %212 = vmatpush3.xpose.msra.mxu0 %v50_v10 }
  0x2d   :  { %213 = vmatprep.subr.mxu0 %v289_v0 }
  0x30   :  { %214 = vmatpush3.xpose.msra.mxu0 %v49_v11 }
  0x31   :  { %215 = vmatprep.subr.mxu0 %v289_v0 }
  0x34   :  { %216 = vmatpush3.xpose.msra.mxu0 %v48_v12 }
  0x35   :  { %217 = vmatprep.subr.mxu0 %v289_v0 }
  0x38   :  { %218 = vmatpush3.xpose.msra.mxu0 %v47_v13 }
  0x39   :  { %219 = vmatprep.subr.mxu0 %v289_v0 }
  0x3c   :  { %220 = vmatpush3.xpose.msra.mxu0 %v46_v14 }
  0x3d   :  { %221 = vmatprep.subr.mxu0 %v289_v0 }
  0x40   :  { %222 = vmatpush3.xpose.msra.mxu0 %v45_v15 }
  0x41   :  { %223 = vmatprep.subr.mxu0 %v289_v0 }
  0x44   :  { %224 = vmatpush3.xpose.msra.mxu0 %v44_v16 }
  0x45   :  { %225 = vmatprep.subr.mxu0 %v289_v0 }
  0x48   :  { %226 = vmatpush3.xpose.msra.mxu0 %v43_v17 }
  0x49   :  { %227 = vmatprep.subr.mxu0 %v289_v0 }
  0x4c   :  { %228 = vmatpush3.xpose.msra.mxu0 %v42_v18 }
  0x4f   :  { %230 = vmatmul.mubr.f32.vlgmr.msra.gmra.mxu0 %v41_v19 }
  0x8c   :  { %v138_v21 = vpop.permute.xlu0 %137 }
  0x8d   :  { %v146_v23 = vadd.f32 %v178_v20, %v138_v21 }
 0x10f   :  { %v124_v22 = vpop.f32.mrf.mxu0 }
 0x110   :  { %v148_v25 = vmul.f32 2.0, %v124_v22 }
 0x111   :  { %v231_v24 = vpop.f32.mrf.mxu0 }
 0x112   :  { %v149_v26 = vsub.f32 %v146_v23, %v148_v25 }
 0x114   :  { %v150_v28 = vmax.f32 %v149_v26, 0.0 }
 0x116   :  { %v158_v29 = vmul.f32 %v179_v27, %v150_v28 }
 0x118   :  { %v159_v30 = vsub.f32 0.0, %v158_v29 }
 0x11a   :  { %v160_v31 = vmul.f32 1.442695, %v159_v30 }
 0x11c   :  { %240 = vpow2.f32 %v160_v31 }
 0x129   :  { %v241_v32 = vpop.eup %240 }
 0x12a   :  { %162 = vst [vmem:[#allocation5] sm:$0xff] %v241_v32 }
 0x12b   :  { %273 = shalt.err (!%p270_p9)
}
 0x12c   :  { %172 = dma.vmem_to_hbm [thread:$0]  %s170_s6, 128, %s346_s5, [#allocation4]  }
 0x12d   :  { %284 = dma.done.wait [#allocation4], 128  }
 0x12e   :  { %285 = vsyncadd [#allocation4], 4294967168 }
 0x12f   :  { %176 = vsyncpa [#allocation3], 1 }
 0x130   :  { %177 = vsyncpa [#allocation4], 1 }

</bundles_post_ra>
